<compile_context>
chip_gen: v6e
topology: v6e:2x2x1
jax: 0.10.0
libtpu: 0.0.40
codegen_flags: <defaults>
</compile_context>

<pallas_src>
import jax
import jax.numpy as jnp
from jax.experimental import pallas as pl
from jax.experimental.pallas import tpu as pltpu


def _round_up(x, m):
    return ((x + m - 1) // m) * m


def _pad_to(a, shape):
    return jnp.pad(a, [(0, t - s) for s, t in zip(a.shape, shape)])


def _pipeline_kernel(x_ref, w1_ref, b1_ref, w2_ref, b2_ref, w3_ref, b3_ref,
                     wc_ref, bc_ref, out_ref):
    """Fused vfe -> backbone_3d -> adapter -> task_head for one tile of points.

    Input tile is unpadded f32 (cast to bf16 here); weights are bf16
    (MXU-native); accumulation and biases are f32.  Hidden dims are padded to
    lane multiples (VMEM-only, zero columns/rows so they contribute exactly 0).
    """
    x = x_ref[...].astype(jnp.bfloat16)                              # (tm, c_in)

    # vfe: Linear + ReLU
    h = jnp.dot(x, w1_ref[...], preferred_element_type=jnp.float32) + b1_ref[...]
    h = jnp.maximum(h, 0.0).astype(jnp.bfloat16)

    # backbone_3d: Linear + ReLU
    h = jnp.dot(h, w2_ref[...], preferred_element_type=jnp.float32) + b2_ref[...]
    h = jnp.maximum(h, 0.0).astype(jnp.bfloat16)

    # adapter: Linear + ReLU
    h = jnp.dot(h, w3_ref[...], preferred_element_type=jnp.float32) + b3_ref[...]
    h = jnp.maximum(h, 0.0).astype(jnp.bfloat16)

    # task_head classifier: Linear -> semantic scores (f32, real class width)
    out_ref[...] = (jnp.dot(h, wc_ref[...], preferred_element_type=jnp.float32)
                    + bc_ref[...])


def prepare_params(params, *, lane=128):
    """One-time weight preparation (do this at model build, NOT per call).

    Zero-pads the hidden dimension to a lane multiple (128, or 256 once the
    hidden size reaches the v6e/v7x 256x256 MXU tile) and casts weights to
    bf16.  Biases stay f32 (added post-accumulation); padded bias lanes are
    zero so padded hidden lanes stay exactly zero through ReLU.
    The input feature dim and the class dim are left unpadded (HBM I/O).
    """
    c_in, hidden = params["vfe_w"].shape
    num_class = params["cls_w"].shape[1]
    mult = 256 if hidden >= 256 else lane
    hid_p = _round_up(hidden, mult)
    return {
        "w1": _pad_to(params["vfe_w"].astype(jnp.bfloat16), (c_in, hid_p)),
        "b1": _pad_to(params["vfe_b"].astype(jnp.float32), (1, hid_p)),
        "w2": _pad_to(params["backbone_w"].astype(jnp.bfloat16), (hid_p, hid_p)),
        "b2": _pad_to(params["backbone_b"].astype(jnp.float32), (1, hid_p)),
        "w3": _pad_to(params["adapter_w"].astype(jnp.bfloat16), (hid_p, hid_p)),
        "b3": _pad_to(params["adapter_b"].astype(jnp.float32), (1, hid_p)),
        "wc": _pad_to(params["cls_w"].astype(jnp.bfloat16), (hid_p, num_class)),
        "bc": params["cls_b"].astype(jnp.float32),
    }


def model_template_forward(points, prepared, *, tile_n=2048):
    """Run the fused per-point pipeline.

    points:   (N, C_in) float32 per-point features (unpadded).
    prepared: output of prepare_params() (bf16 weights, f32 biases).
    returns ret_dict with 'semantic_scores' of shape (N, num_class), f32.
    """
    n, c_in = points.shape
    w1, b1 = prepared["w1"], prepared["b1"]
    w2, b2 = prepared["w2"], prepared["b2"]
    w3, b3 = prepared["w3"], prepared["b3"]
    wc, bc = prepared["wc"], prepared["bc"]
    hid_p = w2.shape[0]
    num_class = wc.shape[1]

    # Tile rows: multiple of 8 sublanes, capped at (rounded) N; keep >=2 grid
    # steps when the cloud is big enough so both v7x TensorCores get work.
    tile_n = _round_up(max(8, min(tile_n, _round_up(n, 8))), 8)
    if n > 8 and pl.cdiv(n, tile_n) < 2:
        tile_n = _round_up(pl.cdiv(n, 2), 8)
    grid = pl.cdiv(n, tile_n)

    tile = lambda i: (i, 0)     # points / output : tiled along N
    const = lambda i: (0, 0)    # weights / biases: resident, same block every step

    def const_spec(arr):
        # Grid-invariant -> a single VMEM buffer is enough (VMEM headroom on v7x).
        return pl.BlockSpec(arr.shape, const, pipeline_mode=pl.Buffered(1))

    # VMEM budget: double-buffered I/O tiles + single-buffered weights + a
    # margin for in-kernel f32/bf16 activation scratch.
    weight_bytes = sum(int(a.size) * a.dtype.itemsize
                       for a in (w1, b1, w2, b2, w3, b3, wc, bc))
    io_bytes = 2 * tile_n * (c_in * 4 + num_class * 4)
    act_bytes = 4 * tile_n * hid_p * 4
    vmem_limit = int(min(max(2 * (weight_bytes + io_bytes + act_bytes),
                             32 * 1024 * 1024),
                         64 * 1024 * 1024))

    scores = pl.pallas_call(
        _pipeline_kernel,
        out_shape=jax.ShapeDtypeStruct((n, num_class), jnp.float32),
        grid_spec=pltpu.PrefetchScalarGridSpec(
            num_scalar_prefetch=0,
            grid=(grid,),
            in_specs=[
                pl.BlockSpec((tile_n, c_in), tile),   # unpadded f32 points
                const_spec(w1), const_spec(b1),
                const_spec(w2), const_spec(b2),
                const_spec(w3), const_spec(b3),
                const_spec(wc), const_spec(bc),
            ],
            out_specs=pl.BlockSpec((tile_n, num_class), tile),  # unpadded out
        ),
        compiler_params=pltpu.CompilerParams(
            dimension_semantics=("parallel",),
            vmem_limit_bytes=vmem_limit,
        ),
    )(points, w1, b1, w2, b2, w3, b3, wc, bc)

    # forward() returns task_head.forward_ret_dict
    return {"semantic_scores": scores}


def _init_params(key, c_in, hidden, num_class):
    ks = jax.random.split(key, 4)

    def lin(k, fan_in, fan_out):
        scale = 1.0 / jnp.sqrt(fan_in)
        w = jax.random.uniform(k, (fan_in, fan_out), jnp.float32, -scale, scale)
        b = jnp.zeros((1, fan_out), jnp.float32)
        return w, b

    p = {}
    p["vfe_w"], p["vfe_b"] = lin(ks[0], c_in, hidden)
    p["backbone_w"], p["backbone_b"] = lin(ks[1], hidden, hidden)
    p["adapter_w"], p["adapter_b"] = lin(ks[2], hidden, hidden)
    p["cls_w"], p["cls_b"] = lin(ks[3], hidden, num_class)
    return p


def _reference(points, p):
    """Pure-JAX reference matching the kernel's dtype pattern (bf16 operands,
    f32 accumulation)."""
    def layer(x, w, b, relu=True):
        y = jnp.dot(x.astype(jnp.bfloat16), w.astype(jnp.bfloat16),
                    preferred_element_type=jnp.float32) + b
        return jnp.maximum(y, 0.0).astype(jnp.bfloat16) if relu else y

    h = layer(points, p["vfe_w"], p["vfe_b"])
    h = layer(h, p["backbone_w"], p["backbone_b"])
    h = layer(h, p["adapter_w"], p["adapter_b"])
    return layer(h, p["cls_w"], p["cls_b"], relu=False)


if __name__ == "__main__":
    key = jax.random.PRNGKey(0)
    k_pts, k_par = jax.random.split(key)

    # Small synthetic shapes; N deliberately NOT a multiple of the tile size.
    N, C_IN, HIDDEN, NUM_CLASS = 200, 16, 32, 13
    points = jax.random.normal(k_pts, (N, C_IN), jnp.float32)
    params = _init_params(k_par, C_IN, HIDDEN, NUM_CLASS)

    # One-time weight prep (pad hidden dims, cast to bf16) outside the hot path.
    prepared = prepare_params(params)

    # tile_n=128 here so the toy N=200 still exercises a multi-step grid with
    # a partial boundary block; the production default is 2048.
    ret_dict = model_template_forward(points, prepared, tile_n=128)
    scores = jax.block_until_ready(ret_dict["semantic_scores"])

    ref = _reference(points, params)
    assert scores.shape == (N, NUM_CLASS)
    assert jnp.allclose(scores, ref, atol=1e-2, rtol=1e-2), (
        float(jnp.max(jnp.abs(scores - ref))))

    print("KERNEL_OK")
</pallas_src>

<mosaic_0001>
module attributes {stable_mosaic.version = 11 : i64} {
  func.func @_pipeline_kernel(%arg0: i32, %arg1: memref<128x16xf32, #tpu.memory_space<vmem>>, %arg2: memref<16x128xbf16, #tpu.memory_space<vmem>>, %arg3: memref<1x128xf32, #tpu.memory_space<vmem>>, %arg4: memref<128x128xbf16, #tpu.memory_space<vmem>>, %arg5: memref<1x128xf32, #tpu.memory_space<vmem>>, %arg6: memref<128x128xbf16, #tpu.memory_space<vmem>>, %arg7: memref<1x128xf32, #tpu.memory_space<vmem>>, %arg8: memref<128x13xbf16, #tpu.memory_space<vmem>>, %arg9: memref<1x13xf32, #tpu.memory_space<vmem>>, %arg10: memref<128x13xf32, #tpu.memory_space<vmem>>) attributes {dimension_semantics = [#tpu.dimension_semantics<parallel>], iteration_bounds = array<i64: 2>, scalar_prefetch = 0 : i64, scratch_operands = 0 : i64, tpu.core_type = #tpu.core_type<tc>, window_params = [{transform_indices = @transform_0, window_bounds = array<i64: 128, 16>}, {pipeline_mode = #tpu.pipeline_mode<synchronous>, transform_indices = @transform_1, window_bounds = array<i64: 16, 128>}, {pipeline_mode = #tpu.pipeline_mode<synchronous>, transform_indices = @transform_2, window_bounds = array<i64: 1, 128>}, {pipeline_mode = #tpu.pipeline_mode<synchronous>, transform_indices = @transform_3, window_bounds = array<i64: 128, 128>}, {pipeline_mode = #tpu.pipeline_mode<synchronous>, transform_indices = @transform_4, window_bounds = array<i64: 1, 128>}, {pipeline_mode = #tpu.pipeline_mode<synchronous>, transform_indices = @transform_5, window_bounds = array<i64: 128, 128>}, {pipeline_mode = #tpu.pipeline_mode<synchronous>, transform_indices = @transform_6, window_bounds = array<i64: 1, 128>}, {pipeline_mode = #tpu.pipeline_mode<synchronous>, transform_indices = @transform_7, window_bounds = array<i64: 128, 13>}, {pipeline_mode = #tpu.pipeline_mode<synchronous>, transform_indices = @transform_8, window_bounds = array<i64: 1, 13>}, {transform_indices = @transform_9, window_bounds = array<i64: 128, 13>}]} {
    %c0 = arith.constant 0 : index
    %c0_0 = arith.constant 0 : index
    %0 = vector.load %arg1[%c0, %c0_0] : memref<128x16xf32, #tpu.memory_space<vmem>>, vector<128x16xf32>
    %1 = arith.truncf %0 : vector<128x16xf32> to vector<128x16xbf16>
    %c0_1 = arith.constant 0 : index
    %c0_2 = arith.constant 0 : index
    %2 = vector.load %arg2[%c0_1, %c0_2] : memref<16x128xbf16, #tpu.memory_space<vmem>>, vector<16x128xbf16>
    %cst = arith.constant dense<0.000000e+00> : vector<128x128xf32>
    %3 = tpu.matmul %1, %2, %cst {dimension_numbers = #tpu.dot_dimension_numbers<[1], [0], [0], [1], [0, 0, 1, 1], [], []>} : vector<128x16xbf16>, vector<16x128xbf16>, vector<128x128xf32> -> vector<128x128xf32>
    %c0_3 = arith.constant 0 : index
    %c0_4 = arith.constant 0 : index
    %4 = vector.load %arg3[%c0_3, %c0_4] : memref<1x128xf32, #tpu.memory_space<vmem>>, vector<1x128xf32>
    %5 = vector.broadcast %4 : vector<1x128xf32> to vector<128x128xf32>
    %6 = arith.addf %3, %5 : vector<128x128xf32>
    %cst_5 = arith.constant 0.000000e+00 : f32
    %7 = vector.broadcast %cst_5 : f32 to vector<128x128xf32>
    %8 = arith.maximumf %6, %7 : vector<128x128xf32>
    %9 = arith.truncf %8 : vector<128x128xf32> to vector<128x128xbf16>
    %c0_6 = arith.constant 0 : index
    %c0_7 = arith.constant 0 : index
    %10 = vector.load %arg4[%c0_6, %c0_7] : memref<128x128xbf16, #tpu.memory_space<vmem>>, vector<128x128xbf16>
    %cst_8 = arith.constant dense<0.000000e+00> : vector<128x128xf32>
    %11 = tpu.matmul %9, %10, %cst_8 {dimension_numbers = #tpu.dot_dimension_numbers<[1], [0], [0], [1], [0, 0, 1, 1], [], []>} : vector<128x128xbf16>, vector<128x128xbf16>, vector<128x128xf32> -> vector<128x128xf32>
    %c0_9 = arith.constant 0 : index
    %c0_10 = arith.constant 0 : index
    %12 = vector.load %arg5[%c0_9, %c0_10] : memref<1x128xf32, #tpu.memory_space<vmem>>, vector<1x128xf32>
    %13 = vector.broadcast %12 : vector<1x128xf32> to vector<128x128xf32>
    %14 = arith.addf %11, %13 : vector<128x128xf32>
    %cst_11 = arith.constant 0.000000e+00 : f32
    %15 = vector.broadcast %cst_11 : f32 to vector<128x128xf32>
    %16 = arith.maximumf %14, %15 : vector<128x128xf32>
    %17 = arith.truncf %16 : vector<128x128xf32> to vector<128x128xbf16>
    %c0_12 = arith.constant 0 : index
    %c0_13 = arith.constant 0 : index
    %18 = vector.load %arg6[%c0_12, %c0_13] : memref<128x128xbf16, #tpu.memory_space<vmem>>, vector<128x128xbf16>
    %cst_14 = arith.constant dense<0.000000e+00> : vector<128x128xf32>
    %19 = tpu.matmul %17, %18, %cst_14 {dimension_numbers = #tpu.dot_dimension_numbers<[1], [0], [0], [1], [0, 0, 1, 1], [], []>} : vector<128x128xbf16>, vector<128x128xbf16>, vector<128x128xf32> -> vector<128x128xf32>
    %c0_15 = arith.constant 0 : index
    %c0_16 = arith.constant 0 : index
    %20 = vector.load %arg7[%c0_15, %c0_16] : memref<1x128xf32, #tpu.memory_space<vmem>>, vector<1x128xf32>
    %21 = vector.broadcast %20 : vector<1x128xf32> to vector<128x128xf32>
    %22 = arith.addf %19, %21 : vector<128x128xf32>
    %cst_17 = arith.constant 0.000000e+00 : f32
    %23 = vector.broadcast %cst_17 : f32 to vector<128x128xf32>
    %24 = arith.maximumf %22, %23 : vector<128x128xf32>
    %25 = arith.truncf %24 : vector<128x128xf32> to vector<128x128xbf16>
    %c0_18 = arith.constant 0 : index
    %c0_19 = arith.constant 0 : index
    %26 = vector.load %arg8[%c0_18, %c0_19] : memref<128x13xbf16, #tpu.memory_space<vmem>>, vector<128x13xbf16>
    %cst_20 = arith.constant dense<0.000000e+00> : vector<128x13xf32>
    %27 = tpu.matmul %25, %26, %cst_20 {dimension_numbers = #tpu.dot_dimension_numbers<[1], [0], [0], [1], [0, 0, 1, 1], [], []>} : vector<128x128xbf16>, vector<128x13xbf16>, vector<128x13xf32> -> vector<128x13xf32>
    %c0_21 = arith.constant 0 : index
    %c0_22 = arith.constant 0 : index
    %28 = vector.load %arg9[%c0_21, %c0_22] : memref<1x13xf32, #tpu.memory_space<vmem>>, vector<1x13xf32>
    %29 = vector.broadcast %28 : vector<1x13xf32> to vector<128x13xf32>
    %30 = arith.addf %27, %29 : vector<128x13xf32>
    %c0_23 = arith.constant 0 : index
    %c0_24 = arith.constant 0 : index
    %31 = vector.load %arg10[%c0_23, %c0_24] : memref<128x13xf32, #tpu.memory_space<vmem>>, vector<128x13xf32>
    tpu.vector_store %arg10[%c0_23, %c0_24], %30 {strides = array<i32>} : memref<128x13xf32, #tpu.memory_space<vmem>>, vector<128x13xf32>,
    return
  }
  func.func @transform_0(%arg0: i32) -> (i32, i32) {
    %c0_i32 = arith.constant 0 : i32
    %c0_i32_0 = arith.constant 0 : i32
    return %arg0, %c0_i32 : i32, i32
  }
  func.func @transform_1(%arg0: i32) -> (i32, i32) {
    %c0_i32 = arith.constant 0 : i32
    %c0_i32_0 = arith.constant 0 : i32
    %c0_i32_1 = arith.constant 0 : i32
    return %c0_i32, %c0_i32_0 : i32, i32
  }
  func.func @transform_2(%arg0: i32) -> (i32, i32) {
    %c0_i32 = arith.constant 0 : i32
    %c0_i32_0 = arith.constant 0 : i32
    %c0_i32_1 = arith.constant 0 : i32
    return %c0_i32, %c0_i32_0 : i32, i32
  }
  func.func @transform_3(%arg0: i32) -> (i32, i32) {
    %c0_i32 = arith.constant 0 : i32
    %c0_i32_0 = arith.constant 0 : i32
    %c0_i32_1 = arith.constant 0 : i32
    return %c0_i32, %c0_i32_0 : i32, i32
  }
  func.func @transform_4(%arg0: i32) -> (i32, i32) {
    %c0_i32 = arith.constant 0 : i32
    %c0_i32_0 = arith.constant 0 : i32
    %c0_i32_1 = arith.constant 0 : i32
    return %c0_i32, %c0_i32_0 : i32, i32
  }
  func.func @transform_5(%arg0: i32) -> (i32, i32) {
    %c0_i32 = arith.constant 0 : i32
    %c0_i32_0 = arith.constant 0 : i32
    %c0_i32_1 = arith.constant 0 : i32
    return %c0_i32, %c0_i32_0 : i32, i32
  }
  func.func @transform_6(%arg0: i32) -> (i32, i32) {
    %c0_i32 = arith.constant 0 : i32
    %c0_i32_0 = arith.constant 0 : i32
    %c0_i32_1 = arith.constant 0 : i32
    return %c0_i32, %c0_i32_0 : i32, i32
  }
  func.func @transform_7(%arg0: i32) -> (i32, i32) {
    %c0_i32 = arith.constant 0 : i32
    %c0_i32_0 = arith.constant 0 : i32
    %c0_i32_1 = arith.constant 0 : i32
    return %c0_i32, %c0_i32_0 : i32, i32
  }
  func.func @transform_8(%arg0: i32) -> (i32, i32) {
    %c0_i32 = arith.constant 0 : i32
    %c0_i32_0 = arith.constant 0 : i32
    %c0_i32_1 = arith.constant 0 : i32
    return %c0_i32, %c0_i32_0 : i32, i32
  }
  func.func @transform_9(%arg0: i32) -> (i32, i32) {
    %c0_i32 = arith.constant 0 : i32
    %c0_i32_0 = arith.constant 0 : i32
    return %arg0, %c0_i32 : i32, i32
  }
}

</mosaic_0001>

<bundles_post_ra>
// kernel: tpu_custom_call.1
= control target key start
LH: loop header
LB: loop body
LE: loop exit
PB: predicated region body
PF: predicated region fallthrough
CT: control target
= control target key end

     0   :  { %s1887_s30 = smov 0   ;;  %s1889_s10 = smov 0   ;;  %s2178_s0 = inlined_call_operand.vmem [shape: f32[200,16], index: 0, kind: input, shape index: {}]   ;;  %s2179_s1 = inlined_call_operand.vmem [shape: bf16[16,128], index: 1, kind: input, shape index: {}]   ;;  %s2180_s2 = inlined_call_operand.vmem [shape: f32[1,128], index: 2, kind: input, shape index: {}]   ;;  %s2181_s3 = inlined_call_operand.vmem [shape: bf16[128,128], index: 3, kind: input, shape index: {}]   ;;  %s2182_s4 = inlined_call_operand.vmem [shape: f32[1,128], index: 4, kind: input, shape index: {}]   ;;  %s2183_s5 = inlined_call_operand.vmem [shape: bf16[128,128], index: 5, kind: input, shape index: {}]   ;;  %s2184_s6 = inlined_call_operand.vmem [shape: f32[1,128], index: 6, kind: input, shape index: {}]   ;;  %s2185_s7 = inlined_call_operand.vmem [shape: bf16[128,13], index: 7, kind: input, shape index: {}]   ;;  %s2186_s8 = inlined_call_operand.vmem [shape: f32[1,13], index: 8, kind: input, shape index: {}]   ;;  %s2187_s9 = inlined_call_operand.vmem [shape: f32[200,13], index: 9, kind: output, shape index: {}]  }
   0x1   :  { %s1891_s11 = smov 0  }
   0x2 LB: > { %s1900_s12 = sadd.s32 4294967295, %s1803_s11   ;;  %s1902_s13 = sadd.s32 1, %s1803_s11   ;;  %s1803_s11 = sphi %s1891_s11, %s2194_s11   ;;  %s1799_s10 = sphi %s1889_s10, %s2193_s10   ;;  %s1795_s30 = sphi %s1887_s30, %s2192_s30  }
   0x3   : > { %s217_s14 = ssub.s32 %s1803_s11, %s1902_s13  ;;  %s220_s15 = sadd.s32 1, %s1799_s10 }
   0x4   : > { %p218_p0 = scmp.eq.s32.totalorder %s217_s14, 0  ;;  %p230_p1 = scmp.ne.s32.totalorder %s1799_s10, %s1795_s30 }
   0x5   : > { %p231_p2 = scmp.eq.s32.totalorder %s1900_s12, 1  ;;  %p1388_p3 = scmp.ge.s32.totalorder %s1803_s11, 1 }
   0x6   : > { %s1910_s16 = scalar_select %p218_p0, %s1799_s10, %s220_s15  }
   0x7   : > { %p1912_p4 = por %p231_p2, %p230_p1  ;;  %p296_p5 = scmp.lt.s32.totalorder %s1803_s11, 3 }
   0x9   : > { %p297_p6 = pnand %p1388_p3, %p296_p5 }
   0xa   : > { %s1920_s20 = sshll.u32 (!%p297_p6), %s1900_s12, 4  ;;  %s332_s24 = sand.u32 (!%p297_p6), 1, %s1795_s30  }
   0xb   : > { %300 = sbr.rel (%p297_p6) target bundleno = 909 (0x38d), region = 56  ;;  %p340_p7 = scmp.lt.s32.totalorder (!%p297_p6), %s1920_s20, 24 }
   0xc   : > { %s1389_s25 = sshll.u32 (!%p297_p6), %s332_s24, 7 }
   0xd   : > { %s2044_s28 = scalar_lea.vmem (!%p297_p6), [#allocation2], %s1389_s25  }
  0x10   : > { %v1724_v0 = vld [vmem:[%s2179_s1] sm:$0xff]   ;;  %v1725_v1 = vld [vmem:[%s2181_s3 + $0x38] sm:$0xff]   ;;  %s341_s23 = scalar_select %p340_p7, %s1920_s20, 24  ;;  %v1726_v2 = vld [vmem:[%s2181_s3 + $0x30] sm:$0xff]   ;;  %vm394_vm0 = vcmask 130048   ;;  %vm1092_vm1 = vcmask 105472  }
  0x11   : > { %1506 = vmatprep.subr.bf16.mxu0 %v1724_v0  ;;  %1524 = vmatprep.subr.bf16.mxu1 %v1725_v1  ;;  %v1727_v3 = vld [vmem:[%s2181_s3 + $0x28] sm:$0xff]   ;;  %v1728_v13 = vld [vmem:[%s2181_s3 + $0x20] sm:$0xff]   ;;  %v1729_v18 = vld [vmem:[%s2181_s3 + $0x18] sm:$0xff]   ;;  %s1117_s30 = ssub.s32 (%p1912_p4), 25, %s1920_s20 }
  0x12   : > { %1507 = vmatpush3.bf16.msra.mxu0 %v1724_v0  ;;  %s1391_s26 = sshll.u32 %s341_s23, 3  ;;  %1525 = vmatpush3.bf16.msra.mxu1 %v1725_v1  ;;  %v1730_v30 = vld [vmem:[%s2181_s3 + $0x10] sm:$0xff]   ;;  %v1731_v31 = vld [vmem:[%s2181_s3 + $0x8] sm:$0xff]   ;;  %v1732_v32 = vld [vmem:[%s2181_s3] sm:$0xff]   ;;  %p1118_p8 = scmp.lt.s32.totalorder (%p1912_p4), %s1117_s30, 16 }
  0x13   : > { %s1933_s29 = scalar_lea.vmem %s2178_s0, %s1391_s26  ;;  %1526 = vmatprep.subr.bf16.mxu1 %v1726_v2  ;;  %v1733_v33 = vld [vmem:[%s2183_s5 + $0x38] sm:$0xff]   ;;  %v1734_v34 = vld [vmem:[%s2183_s5 + $0x30] sm:$0xff]   ;;  %v1735_v35 = vld [vmem:[%s2183_s5 + $0x28] sm:$0xff]  }
  0x14   : > { %v355_v4 = vld [vmem:[%s1933_s29] sm:$0xff]  ;;  %v356_v5 = vld [vmem:[%s1933_s29 + $0x8] sm:$0xff]  ;;  %v357_v6 = vld [vmem:[%s1933_s29 + $0x10] sm:$0xff]  ;;  %1556 = vmatprep.subr.bf16.mxu0 %v1733_v33 }
  0x15   : > { %v371_v7 = vpack.c.bf16 %v356_v5, %v355_v4  ;;  %v358_v8 = vld [vmem:[%s1933_s29 + $0x18] sm:$0xff]  ;;  %v359_v9 = vld [vmem:[%s1933_s29 + $0x20] sm:$0xff]  ;;  %v360_v10 = vld [vmem:[%s1933_s29 + $0x28] sm:$0xff] }
  0x16   : > { %v372_v11 = vpack.c.bf16 %v358_v8, %v357_v6  ;;  %v373_v12 = vpack.c.bf16 %v360_v10, %v359_v9  ;;  %1527 = vmatpush3.bf16.msra.mxu1 %v1726_v2  ;;  %v361_v14 = vld [vmem:[%s1933_s29 + $0x30] sm:$0xff]  ;;  %v362_v15 = vld [vmem:[%s1933_s29 + $0x38] sm:$0xff]  ;;  %v363_v16 = vld [vmem:[%s1933_s29 + $0x40] sm:$0xff] }
  0x17   : > { %1508 = vmatprep.mubr.msk.bf16.mxu0 %vm394_vm0, %v371_v7  ;;  %1528 = vmatprep.subr.bf16.mxu1 %v1727_v3  ;;  %v364_v17 = vld [vmem:[%s1933_s29 + $0x48] sm:$0xff]  ;;  %v374_v19 = vpack.c.bf16 %v362_v15, %v361_v14  ;;  %v365_v21 = vld [vmem:[%s1933_s29 + $0x50] sm:$0xff]  ;;  %v366_v22 = vld [vmem:[%s1933_s29 + $0x58] sm:$0xff] }
  0x18   : > { %1509 = vmatmul.mubr.msk.bf16.vlgmr.msra.gmra.mxu0 %vm394_vm0, %v372_v11  ;;  %v375_v20 = vpack.c.bf16 %v364_v17, %v363_v16  ;;  %v367_v23 = vld [vmem:[%s1933_s29 + $0x60] sm:$0xff]  ;;  %v368_v24 = vld [vmem:[%s1933_s29 + $0x68] sm:$0xff]  ;;  %v376_v25 = vpack.c.bf16 %v366_v22, %v365_v21  ;;  %v369_v27 = vld [vmem:[%s1933_s29 + $0x70] sm:$0xff] }
  0x19   : > { %1512 = vmatprep.mubr.msk.bf16.mxu0 %vm394_vm0, %v373_v12  ;;  %v377_v26 = vpack.c.bf16 %v368_v24, %v367_v23  ;;  %v370_v28 = vld [vmem:[%s1933_s29 + $0x78] sm:$0xff]  ;;  %1557 = vmatpush3.bf16.msra.mxu0 %v1733_v33  ;;  %v1736_v36 = vld [vmem:[%s2183_s5 + $0x20] sm:$0xff]   ;;  %s1446_s29 = sshll.u32 (%p1912_p4), %s1900_s12, 7 }
  0x1a   : > { %1529 = vmatpush3.bf16.msra.mxu1 %v1727_v3  ;;  %v378_v29 = vpack.c.bf16 %v370_v28, %v369_v27  ;;  %1558 = vmatprep.subr.bf16.mxu0 %v1734_v34  ;;  %v1737_v37 = vld [vmem:[%s2183_s5 + $0x18] sm:$0xff]   ;;  %v1392_v40 = vld [vmem:[%s2180_s2] ss:$0 sm:$0xff]  ;;  %s2085_s15 = scalar_lea.vmem (%p1912_p4), %s2187_s9, %s1446_s29  }
  0x1b   : > { %1530 = vmatprep.subr.bf16.mxu1 %v1728_v13  ;;  %v1740_v33 = vld [vmem:[%s2183_s5] sm:$0xff]  }
  0x1d   : > { %1559 = vmatpush3.bf16.msra.mxu0 %v1734_v34  ;;  %v1741_v34 = vld [vmem:[%s2185_s7 + $0x38] sm:$0xff]  }
  0x1e   : > { %1531 = vmatpush3.bf16.msra.mxu1 %v1728_v13  ;;  %1560 = vmatprep.subr.bf16.mxu0 %v1735_v35 }
  0x1f   : > { %1532 = vmatprep.subr.bf16.mxu1 %v1729_v18 }
  0x20   : > { %1513 = vmatmul.mubr.msk.bf16.gmra.mxu0 %vm394_vm0, %v374_v19 }
  0x21   : > { %1516 = vmatprep.mubr.msk.bf16.mxu0 %vm394_vm0, %v375_v20  ;;  %1561 = vmatpush3.bf16.msra.mxu0 %v1735_v35  ;;  %v1742_v35 = vld [vmem:[%s2185_s7 + $0x30] sm:$0xff]  }
  0x22   : > { %1533 = vmatpush3.bf16.msra.mxu1 %v1729_v18  ;;  %1562 = vmatprep.subr.bf16.mxu0 %v1736_v36 }
  0x23   : > { %1534 = vmatprep.subr.bf16.mxu1 %v1730_v30 }
  0x25   : > { %1563 = vmatpush3.bf16.msra.mxu0 %v1736_v36  ;;  %v1743_v36 = vld [vmem:[%s2185_s7 + $0x28] sm:$0xff]  }
  0x26   : > { %1535 = vmatpush3.bf16.msra.mxu1 %v1730_v30  ;;  %1564 = vmatprep.subr.bf16.mxu0 %v1737_v37 }
  0x27   : > { %1536 = vmatprep.subr.bf16.mxu1 %v1731_v31 }
  0x28   : > { %1517 = vmatmul.mubr.msk.bf16.gmra.mxu0 %vm394_vm0, %v376_v25 }
  0x29   : > { %1520 = vmatprep.mubr.msk.bf16.mxu0 %vm394_vm0, %v377_v26  ;;  %1565 = vmatpush3.bf16.msra.mxu0 %v1737_v37  ;;  %v1744_v37 = vld [vmem:[%s2185_s7 + $0x20] sm:$0xff]  }
  0x2a   : > { %1537 = vmatpush3.bf16.msra.mxu1 %v1731_v31  ;;  %v1738_v31 = vld [vmem:[%s2183_s5 + $0x10] sm:$0xff]  }
  0x2b   : > { %1538 = vmatprep.subr.bf16.mxu1 %v1732_v32  ;;  %1566 = vmatprep.subr.bf16.mxu0 %v1738_v31 }
  0x2d   : > { %1567 = vmatpush3.bf16.msra.mxu0 %v1738_v31 }
  0x2e   : > { %1539 = vmatpush3.bf16.msra.mxu1 %v1732_v32  ;;  %v1739_v32 = vld [vmem:[%s2183_s5 + $0x8] sm:$0xff]  }
  0x2f   : > { %1568 = vmatprep.subr.bf16.mxu0 %v1739_v32  ;;  %1620 = vmatprep.subr.bf16.mxu1 %v1741_v34 }
  0x30   : > { %1521 = vmatmul.mubr.msk.bf16.gmra.mxu0 %vm394_vm0, %v378_v29 }
  0x31   : > { %1569 = vmatpush3.bf16.msra.mxu0 %v1739_v32  ;;  %v1746_v32 = vld [vmem:[%s2185_s7 + $0x10] sm:$0xff]  }
  0x32   : > { %1570 = vmatprep.subr.bf16.mxu0 %v1740_v33 }
  0x35   : > { %1571 = vmatpush3.bf16.msra.mxu0 %v1740_v33  ;;  %v1747_v33 = vld [vmem:[%s2185_s7 + $0x8] sm:$0xff]  }
  0x36   : > { %1588 = vmatprep.subr.bf16.mxu0 %v1741_v34 }
  0xd8   : > { %v1510_v38 = vpop.f32.mrf.mxu0 }
  0xd9   : > { %v462_v44 = vadd.f32 %v1510_v38, %v1392_v40  ;;  %v2019_v38 = vld [vmem:[%s2185_s7 + $0x18] sm:$0xff]  }
  0xda   : > { %v453_v39 = vpop.f32.mrf.mxu0 }
  0xdb   : > { %v454_v42 = vadd.f32 %v1392_v40, %v453_v39  ;;  %v518_v51 = vmax.f32 %v462_v44, 0.0 }
  0xdc   : > { %v1511_v41 = vpop.f32.mrf.mxu0 }
  0xdd   : > { %v465_v43 = vadd.f32 %v1511_v41, %v1392_v40  ;;  %v516_v49 = vmax.f32 %v454_v42, 0.0  ;;  %v1402_v41 = vld [vmem:[%s2182_s4] ss:$0 sm:$0xff] }
  0xde   : > { %v456_v45 = vpop.f32.mrf.mxu0 }
  0xdf   : > { %v457_v46 = vadd.f32 %v1392_v40, %v456_v45  ;;  %v519_v47 = vmax.f32 %v465_v43, 0.0 }
  0xe0   : > { %v1514_v48 = vpop.f32.mrf.mxu0 }
  0xe1   : > { %v517_v50 = vmax.f32 %v457_v46, 0.0  ;;  %v533_v54 = vpack.c.bf16 %v519_v47, %v518_v51  ;;  %v478_v58 = vadd.f32 %v1514_v48, %v1392_v40 }
  0xe2   : > { %v469_v52 = vpop.f32.mrf.mxu0 }
  0xe3   : > { %v532_v53 = vpack.c.bf16 %v517_v50, %v516_v49  ;;  %v470_v56 = vadd.f32 %v1392_v40, %v469_v52  ;;  %v522_v1 = vmax.f32 %v478_v58, 0.0 }
  0xe4   : > { %v1515_v55 = vpop.f32.mrf.mxu0 }
  0xe5   : > { %v481_v57 = vadd.f32 %v1515_v55, %v1392_v40  ;;  %1540 = vmatprep.mubr.bf16.mxu1 %v532_v53  ;;  %v520_v63 = vmax.f32 %v470_v56, 0.0 }
  0xe6   : > { %v472_v59 = vpop.f32.mrf.mxu0  ;;  %1541 = vmatmul.mubr.bf16.vlgmr.msra.gmra.mxu1 %v533_v54 }
  0xe7   : > { %v473_v60 = vadd.f32 %v1392_v40, %v472_v59  ;;  %v523_v61 = vmax.f32 %v481_v57, 0.0  ;;  %1628 = vmatpush3.bf16.msra.mxu1 %v1741_v34 }
  0xe8   : > { %v1518_v62 = vpop.f32.mrf.mxu0  ;;  %1621 = vmatprep.subr.bf16.mxu1 %v1742_v35 }
  0xe9   : > { %v521_v0 = vmax.f32 %v473_v60, 0.0  ;;  %v535_v4 = vpack.c.bf16 %v523_v61, %v522_v1  ;;  %v494_v8 = vadd.f32 %v1518_v62, %v1392_v40 }
  0xea   : > { %v485_v2 = vpop.f32.mrf.mxu0 }
  0xeb   : > { %v534_v3 = vpack.c.bf16 %v521_v0, %v520_v63  ;;  %v486_v6 = vadd.f32 %v1392_v40, %v485_v2  ;;  %v526_v15 = vmax.f32 %v494_v8, 0.0  ;;  %1629 = vmatpush3.bf16.msra.mxu1 %v1742_v35 }
  0xec   : > { %v1519_v5 = vpop.f32.mrf.mxu0  ;;  %1622 = vmatprep.subr.bf16.mxu1 %v1743_v36 }
  0xed   : > { %v497_v7 = vadd.f32 %v1519_v5, %v1392_v40  ;;  %1544 = vmatprep.mubr.bf16.mxu1 %v534_v3  ;;  %v524_v13 = vmax.f32 %v486_v6, 0.0 }
  0xee   : > { %v488_v9 = vpop.f32.mrf.mxu0  ;;  %1545 = vmatmul.mubr.bf16.gmra.mxu1 %v535_v4 }
  0xef   : > { %v489_v10 = vadd.f32 %v1392_v40, %v488_v9  ;;  %v527_v11 = vmax.f32 %v497_v7, 0.0  ;;  %1630 = vmatpush3.bf16.msra.mxu1 %v1743_v36 }
  0xf0   : > { %v1522_v12 = vpop.f32.mrf.mxu0  ;;  %1623 = vmatprep.subr.bf16.mxu1 %v1744_v37 }
  0xf1   : > { %v525_v14 = vmax.f32 %v489_v10, 0.0  ;;  %v537_v18 = vpack.c.bf16 %v527_v11, %v526_v15  ;;  %v510_v22 = vadd.f32 %v1522_v12, %v1392_v40 }
  0xf2   : > { %v501_v16 = vpop.f32.mrf.mxu0 }
  0xf3   : > { %v536_v17 = vpack.c.bf16 %v525_v14, %v524_v13  ;;  %v502_v20 = vadd.f32 %v1392_v40, %v501_v16  ;;  %v530_v28 = vmax.f32 %v510_v22, 0.0  ;;  %1631 = vmatpush3.bf16.msra.mxu1 %v1744_v37 }
  0xf4   : > { %v1523_v19 = vpop.f32.mrf.mxu0  ;;  %1624 = vmatprep.subr.bf16.mxu1 %v2019_v38 }
  0xf5   : > { %v513_v21 = vadd.f32 %v1523_v19, %v1392_v40  ;;  %1548 = vmatprep.mubr.bf16.mxu1 %v536_v17  ;;  %v528_v26 = vmax.f32 %v502_v20, 0.0 }
  0xf6   : > { %v504_v23 = vpop.f32.mrf.mxu0  ;;  %1549 = vmatmul.mubr.bf16.gmra.mxu1 %v537_v18 }
  0xf7   : > { %v505_v24 = vadd.f32 %v1392_v40, %v504_v23  ;;  %v531_v25 = vmax.f32 %v513_v21, 0.0  ;;  %1632 = vmatpush3.bf16.msra.mxu1 %v2019_v38 }
  0xf8   : > { %1625 = vmatprep.subr.bf16.mxu1 %v1746_v32 }
  0xf9   : > { %v529_v27 = vmax.f32 %v505_v24, 0.0  ;;  %v539_v30 = vpack.c.bf16 %v531_v25, %v530_v28 }
  0xfb   : > { %v538_v29 = vpack.c.bf16 %v529_v27, %v528_v26  ;;  %1633 = vmatpush3.bf16.msra.mxu1 %v1746_v32 }
  0xfc   : > { %1626 = vmatprep.subr.bf16.mxu1 %v1747_v33 }
  0xfd   : > { %1552 = vmatprep.mubr.bf16.mxu1 %v538_v29 }
  0xfe   : > { %1553 = vmatmul.mubr.bf16.gmra.mxu1 %v539_v30 }
  0xff   : > { %1634 = vmatpush3.bf16.msra.mxu1 %v1747_v33 }
 0x1a6   : > { %v1542_v39 = vpop.f32.mrf.mxu1 }
 0x1a7   : > { %v654_v45 = vadd.f32 %v1542_v39, %v1402_v41 }
 0x1a8   : > { %v645_v40 = vpop.f32.mrf.mxu1 }
 0x1a9   : > { %v646_v43 = vadd.f32 %v1402_v41, %v645_v40  ;;  %v710_v52 = vmax.f32 %v654_v45, 0.0 }
 0x1aa   : > { %v1543_v42 = vpop.f32.mrf.mxu1 }
 0x1ab   : > { %v657_v44 = vadd.f32 %v1543_v42, %v1402_v41  ;;  %v708_v50 = vmax.f32 %v646_v43, 0.0 }
 0x1ac   : > { %v648_v46 = vpop.f32.mrf.mxu1 }
 0x1ad   : > { %v649_v47 = vadd.f32 %v1402_v41, %v648_v46  ;;  %v711_v48 = vmax.f32 %v657_v44, 0.0 }
 0x1ae   : > { %v1546_v49 = vpop.f32.mrf.mxu1 }
 0x1af   : > { %v709_v51 = vmax.f32 %v649_v47, 0.0  ;;  %v725_v55 = vpack.c.bf16 %v711_v48, %v710_v52  ;;  %v670_v59 = vadd.f32 %v1546_v49, %v1402_v41 }
 0x1b0   : > { %v661_v53 = vpop.f32.mrf.mxu1 }
 0x1b1   : > { %v724_v54 = vpack.c.bf16 %v709_v51, %v708_v50  ;;  %v662_v57 = vadd.f32 %v1402_v41, %v661_v53  ;;  %v714_v2 = vmax.f32 %v670_v59, 0.0 }
 0x1b2   : > { %v1547_v56 = vpop.f32.mrf.mxu1 }
 0x1b3   : > { %v673_v58 = vadd.f32 %v1547_v56, %v1402_v41  ;;  %1572 = vmatprep.mubr.bf16.mxu0 %v724_v54  ;;  %v712_v0 = vmax.f32 %v662_v57, 0.0 }
 0x1b4   : > { %v664_v60 = vpop.f32.mrf.mxu1  ;;  %1573 = vmatmul.mubr.bf16.vlgmr.msra.gmra.mxu0 %v725_v55 }
 0x1b5   : > { %v665_v61 = vadd.f32 %v1402_v41, %v664_v60  ;;  %1589 = vmatpush3.bf16.msra.mxu0 %v1741_v34  ;;  %v715_v62 = vmax.f32 %v673_v58, 0.0  ;;  %v1748_v34 = vld [vmem:[%s2185_s7] sm:$0xff]  }
 0x1b6   : > { %v1550_v63 = vpop.f32.mrf.mxu1  ;;  %1590 = vmatprep.subr.bf16.mxu0 %v1742_v35  ;;  %1627 = vmatprep.subr.bf16.mxu1 %v1748_v34 }
 0x1b7   : > { %v713_v1 = vmax.f32 %v665_v61, 0.0  ;;  %v727_v5 = vpack.c.bf16 %v715_v62, %v714_v2  ;;  %v686_v9 = vadd.f32 %v1550_v63, %v1402_v41  ;;  %1635 = vmatpush3.bf16.msra.mxu1 %v1748_v34 }
 0x1b8   : > { %v677_v3 = vpop.f32.mrf.mxu1 }
 0x1b9   : > { %v726_v4 = vpack.c.bf16 %v713_v1, %v712_v0  ;;  %1591 = vmatpush3.bf16.msra.mxu0 %v1742_v35  ;;  %v678_v7 = vadd.f32 %v1402_v41, %v677_v3  ;;  %v718_v16 = vmax.f32 %v686_v9, 0.0 }
 0x1ba   : > { %v1551_v6 = vpop.f32.mrf.mxu1  ;;  %1592 = vmatprep.subr.bf16.mxu0 %v1743_v36 }
 0x1bb   : > { %v689_v8 = vadd.f32 %v1551_v6, %v1402_v41  ;;  %1576 = vmatprep.mubr.bf16.mxu0 %v726_v4  ;;  %v716_v14 = vmax.f32 %v678_v7, 0.0 }
 0x1bc   : > { %v680_v10 = vpop.f32.mrf.mxu1  ;;  %1577 = vmatmul.mubr.bf16.gmra.mxu0 %v727_v5 }
 0x1bd   : > { %v681_v11 = vadd.f32 %v1402_v41, %v680_v10  ;;  %1593 = vmatpush3.bf16.msra.mxu0 %v1743_v36  ;;  %v719_v12 = vmax.f32 %v689_v8, 0.0 }
 0x1be   : > { %v1554_v13 = vpop.f32.mrf.mxu1  ;;  %1594 = vmatprep.subr.bf16.mxu0 %v1744_v37 }
 0x1bf   : > { %v717_v15 = vmax.f32 %v681_v11, 0.0  ;;  %v729_v19 = vpack.c.bf16 %v719_v12, %v718_v16  ;;  %v702_v23 = vadd.f32 %v1554_v13, %v1402_v41 }
 0x1c0   : > { %v693_v17 = vpop.f32.mrf.mxu1 }
 0x1c1   : > { %v728_v18 = vpack.c.bf16 %v717_v15, %v716_v14  ;;  %1595 = vmatpush3.bf16.msra.mxu0 %v1744_v37  ;;  %v694_v21 = vadd.f32 %v1402_v41, %v693_v17  ;;  %v722_v29 = vmax.f32 %v702_v23, 0.0  ;;  %v1411_v37 = vld [vmem:[%s2184_s6] ss:$0 sm:$0xff] }
 0x1c2   : > { %v1555_v20 = vpop.f32.mrf.mxu1  ;;  %1596 = vmatprep.subr.bf16.mxu0 %v2019_v38 }
 0x1c3   : > { %v705_v22 = vadd.f32 %v1555_v20, %v1402_v41  ;;  %1580 = vmatprep.mubr.bf16.mxu0 %v728_v18  ;;  %v720_v27 = vmax.f32 %v694_v21, 0.0 }
 0x1c4   : > { %v696_v24 = vpop.f32.mrf.mxu1  ;;  %1581 = vmatmul.mubr.bf16.gmra.mxu0 %v729_v19 }
 0x1c5   : > { %v697_v25 = vadd.f32 %v1402_v41, %v696_v24  ;;  %1597 = vmatpush3.bf16.msra.mxu0 %v2019_v38  ;;  %v723_v26 = vmax.f32 %v705_v22, 0.0 }
 0x1c6   : > { %1598 = vmatprep.subr.bf16.mxu0 %v1746_v32 }
 0x1c7   : > { %v721_v28 = vmax.f32 %v697_v25, 0.0  ;;  %v731_v31 = vpack.c.bf16 %v723_v26, %v722_v29 }
 0x1c9   : > { %v730_v30 = vpack.c.bf16 %v721_v28, %v720_v27  ;;  %1599 = vmatpush3.bf16.msra.mxu0 %v1746_v32  ;;  %v1420_v28 = vld [vmem:[%s2186_s8] ss:$0 sm:$0xff] }
 0x1ca   : > { %1600 = vmatprep.subr.bf16.mxu0 %v1747_v33 }
 0x1cb   : > { %1584 = vmatprep.mubr.bf16.mxu0 %v730_v30 }
 0x1cc   : > { %1585 = vmatmul.mubr.bf16.gmra.mxu0 %v731_v31 }
 0x1cd   : > { %1601 = vmatpush3.bf16.msra.mxu0 %v1747_v33 }
 0x1ce   : > { %1602 = vmatprep.subr.bf16.mxu0 %v1748_v34 }
 0x1d1   : > { %1603 = vmatpush3.bf16.msra.mxu0 %v1748_v34 }
 0x274   : > { %v1574_v35 = vpop.f32.mrf.mxu0 }
 0x275   : > { %v846_v41 = vadd.f32 %v1574_v35, %v1411_v37 }
 0x276   : > { %v837_v36 = vpop.f32.mrf.mxu0 }
 0x277   : > { %v838_v39 = vadd.f32 %v1411_v37, %v837_v36  ;;  %v902_v48 = vmax.f32 %v846_v41, 0.0 }
 0x278   : > { %v1575_v38 = vpop.f32.mrf.mxu0 }
 0x279   : > { %v849_v40 = vadd.f32 %v1575_v38, %v1411_v37  ;;  %v900_v46 = vmax.f32 %v838_v39, 0.0 }
 0x27a   : > { %v840_v42 = vpop.f32.mrf.mxu0 }
 0x27b   : > { %v841_v43 = vadd.f32 %v1411_v37, %v840_v42  ;;  %v903_v44 = vmax.f32 %v849_v40, 0.0 }
 0x27c   : > { %v1578_v45 = vpop.f32.mrf.mxu0 }
 0x27d   : > { %v901_v47 = vmax.f32 %v841_v43, 0.0  ;;  %v917_v51 = vpack.c.bf16 %v903_v44, %v902_v48  ;;  %v862_v55 = vadd.f32 %v1578_v45, %v1411_v37 }
 0x27e   : > { %v853_v49 = vpop.f32.mrf.mxu0 }
 0x27f   : > { %v916_v50 = vpack.c.bf16 %v901_v47, %v900_v46  ;;  %v854_v53 = vadd.f32 %v1411_v37, %v853_v49  ;;  %v906_v62 = vmax.f32 %v862_v55, 0.0 }
 0x280   : > { %v1579_v52 = vpop.f32.mrf.mxu0 }
 0x281   : > { %v865_v54 = vadd.f32 %v1579_v52, %v1411_v37  ;;  %1604 = vmatprep.mubr.bf16.mxu0 %v916_v50  ;;  %v904_v60 = vmax.f32 %v854_v53, 0.0 }
 0x282   : > { %v856_v56 = vpop.f32.mrf.mxu0  ;;  %1605 = vmatmul.mubr.bf16.vlgmr.msra.gmra.mxu0 %v917_v51 }
 0x283   : > { %v857_v57 = vadd.f32 %v1411_v37, %v856_v56  ;;  %v907_v58 = vmax.f32 %v865_v54, 0.0 }
 0x284   : > { %v1582_v59 = vpop.f32.mrf.mxu0 }
 0x285   : > { %v905_v61 = vmax.f32 %v857_v57, 0.0  ;;  %v919_v1 = vpack.c.bf16 %v907_v58, %v906_v62  ;;  %v878_v5 = vadd.f32 %v1582_v59, %v1411_v37 }
 0x286   : > { %v869_v63 = vpop.f32.mrf.mxu0 }
 0x287   : > { %v918_v0 = vpack.c.bf16 %v905_v61, %v904_v60  ;;  %v870_v3 = vadd.f32 %v1411_v37, %v869_v63  ;;  %v910_v12 = vmax.f32 %v878_v5, 0.0 }
 0x288   : > { %v1583_v2 = vpop.f32.mrf.mxu0 }
 0x289   : > { %v881_v4 = vadd.f32 %v1583_v2, %v1411_v37  ;;  %1608 = vmatprep.mubr.bf16.mxu1 %v918_v0  ;;  %v908_v10 = vmax.f32 %v870_v3, 0.0 }
 0x28a   : > { %v872_v6 = vpop.f32.mrf.mxu0  ;;  %1609 = vmatmul.mubr.bf16.vlgmr.msra.gmra.mxu1 %v919_v1 }
 0x28b   : > { %v873_v7 = vadd.f32 %v1411_v37, %v872_v6  ;;  %v911_v8 = vmax.f32 %v881_v4, 0.0 }
 0x28c   : > { %v1586_v9 = vpop.f32.mrf.mxu0 }
 0x28d   : > { %v909_v11 = vmax.f32 %v873_v7, 0.0  ;;  %v921_v15 = vpack.c.bf16 %v911_v8, %v910_v12  ;;  %v894_v19 = vadd.f32 %v1586_v9, %v1411_v37 }
 0x28e   : > { %v885_v13 = vpop.f32.mrf.mxu0 }
 0x28f   : > { %v920_v14 = vpack.c.bf16 %v909_v11, %v908_v10  ;;  %v886_v17 = vadd.f32 %v1411_v37, %v885_v13  ;;  %v914_v25 = vmax.f32 %v894_v19, 0.0 }
 0x290   : > { %v1587_v16 = vpop.f32.mrf.mxu0 }
 0x291   : > { %v897_v18 = vadd.f32 %v1587_v16, %v1411_v37  ;;  %1612 = vmatprep.mubr.bf16.mxu1 %v920_v14  ;;  %v912_v23 = vmax.f32 %v886_v17, 0.0 }
 0x292   : > { %v888_v20 = vpop.f32.mrf.mxu0  ;;  %1613 = vmatmul.mubr.bf16.gmra.mxu1 %v921_v15 }
 0x293   : > { %v889_v21 = vadd.f32 %v1411_v37, %v888_v20  ;;  %v915_v22 = vmax.f32 %v897_v18, 0.0 }
 0x295   : > { %v913_v24 = vmax.f32 %v889_v21, 0.0  ;;  %v923_v27 = vpack.c.bf16 %v915_v22, %v914_v25 }
 0x297   : > { %v922_v26 = vpack.c.bf16 %v913_v24, %v912_v23 }
 0x299   : > { %1616 = vmatprep.mubr.bf16.mxu1 %v922_v26 }
 0x29a   : > { %1617 = vmatmul.mubr.bf16.gmra.mxu1 %v923_v27 }
 0x342   : > { %v1606_v29 = vpop.f32.mrf.mxu0 }
 0x343   : > { %v1038_v30 = vadd.f32 %v1606_v29, %v1420_v28 }
 0x344   : > { %v1029_v31 = vpop.f32.mrf.mxu0 }
 0x345   : > { %1095 = vst.msk [vmem:[%s2044_s28 + $0x10] sm:$0xff] %vm1092_vm1, %v1038_v30  ;;  %v1030_v32 = vadd.f32 %v1420_v28, %v1029_v31 }
 0x346   : > { %v1607_v33 = vpop.f32.mrf.mxu0 }
 0x347   : > { %1093 = vst.msk [vmem:[%s2044_s28] sm:$0xff] %vm1092_vm1, %v1030_v32  ;;  %v1041_v34 = vadd.f32 %v1607_v33, %v1420_v28 }
 0x348   : > { %v1032_v35 = vpop.f32.mrf.mxu0 }
 0x349   : > { %1096 = vst.msk [vmem:[%s2044_s28 + $0x18] sm:$0xff] %vm1092_vm1, %v1041_v34  ;;  %v1033_v36 = vadd.f32 %v1420_v28, %v1032_v35 }
 0x34a   : > { %v1610_v37 = vpop.f32.mrf.mxu1 }
 0x34b   : > { %1094 = vst.msk [vmem:[%s2044_s28 + $0x8] sm:$0xff] %vm1092_vm1, %v1033_v36  ;;  %v1054_v38 = vadd.f32 %v1610_v37, %v1420_v28 }
 0x34c   : > { %v1045_v39 = vpop.f32.mrf.mxu1 }
 0x34d   : > { %1099 = vst.msk [vmem:[%s2044_s28 + $0x30] sm:$0xff] %vm1092_vm1, %v1054_v38  ;;  %v1046_v40 = vadd.f32 %v1420_v28, %v1045_v39 }
 0x34e   : > { %v1611_v41 = vpop.f32.mrf.mxu1 }
 0x34f   : > { %1097 = vst.msk [vmem:[%s2044_s28 + $0x20] sm:$0xff] %vm1092_vm1, %v1046_v40  ;;  %v1057_v42 = vadd.f32 %v1611_v41, %v1420_v28 }
 0x350   : > { %v1048_v43 = vpop.f32.mrf.mxu1 }
 0x351   : > { %1100 = vst.msk [vmem:[%s2044_s28 + $0x38] sm:$0xff] %vm1092_vm1, %v1057_v42  ;;  %v1049_v44 = vadd.f32 %v1420_v28, %v1048_v43 }
 0x352   : > { %v1614_v45 = vpop.f32.mrf.mxu1 }
 0x353   : > { %1098 = vst.msk [vmem:[%s2044_s28 + $0x28] sm:$0xff] %vm1092_vm1, %v1049_v44  ;;  %v1070_v46 = vadd.f32 %v1614_v45, %v1420_v28 }
 0x354   : > { %v1061_v47 = vpop.f32.mrf.mxu1 }
 0x355   : > { %1103 = vst.msk [vmem:[%s2044_s28 + $0x50] sm:$0xff] %vm1092_vm1, %v1070_v46  ;;  %v1062_v48 = vadd.f32 %v1420_v28, %v1061_v47 }
 0x356   : > { %v1615_v49 = vpop.f32.mrf.mxu1 }
 0x357   : > { %1101 = vst.msk [vmem:[%s2044_s28 + $0x40] sm:$0xff] %vm1092_vm1, %v1062_v48  ;;  %v1073_v50 = vadd.f32 %v1615_v49, %v1420_v28 }
 0x358   : > { %v1064_v51 = vpop.f32.mrf.mxu1 }
 0x359   : > { %1104 = vst.msk [vmem:[%s2044_s28 + $0x58] sm:$0xff] %vm1092_vm1, %v1073_v50  ;;  %v1065_v52 = vadd.f32 %v1420_v28, %v1064_v51 }
 0x35a   : > { %v1618_v53 = vpop.f32.mrf.mxu1 }
 0x35b   : > { %1102 = vst.msk [vmem:[%s2044_s28 + $0x48] sm:$0xff] %vm1092_vm1, %v1065_v52  ;;  %v1086_v54 = vadd.f32 %v1618_v53, %v1420_v28 }
 0x35c   : > { %v1077_v55 = vpop.f32.mrf.mxu1 }
 0x35d   : > { %1107 = vst.msk [vmem:[%s2044_s28 + $0x70] sm:$0xff] %vm1092_vm1, %v1086_v54  ;;  %v1078_v56 = vadd.f32 %v1420_v28, %v1077_v55 }
 0x35e   : > { %v1619_v57 = vpop.f32.mrf.mxu1 }
 0x35f   : > { %1105 = vst.msk [vmem:[%s2044_s28 + $0x60] sm:$0xff] %vm1092_vm1, %v1078_v56  ;;  %v1089_v58 = vadd.f32 %v1619_v57, %v1420_v28  ;;  %1115 = sbr.rel (!%p1912_p4) target bundleno = 909 (0x38d), region = 60 }
 0x360   : > { %v1080_v59 = vpop.f32.mrf.mxu1 }
 0x361   : > { %1108 = vst.msk [vmem:[%s2044_s28 + $0x78] sm:$0xff] %vm1092_vm1, %v1089_v58  ;;  %v1081_v60 = vadd.f32 %v1420_v28, %v1080_v59 }
 0x363   : > { %1106 = vst.msk [vmem:[%s2044_s28 + $0x68] sm:$0xff] %vm1092_vm1, %v1081_v60 }
 0x364   : > { %s2196_s30 = smov (!%p1118_p8, %s1117_s30), 16 }
 0x365   : > { %s1431_s18 = sshll.u32 %s2196_s30, 7 }
 0x366   : > { %p1434_p9 = scmp.eq.s32.totalorder %s1431_s18, 0 }
 0x367   : > { %s2091_s19 = sshrl.u32 (!%p1434_p9), %s2196_s30, 4 }
 0x368   : > { %1126 = sbr.rel (%p1434_p9) target bundleno = 909 (0x38d), region = 64  ;;  %p1435_p10 = scmp.le.s32.totalorder (!%p1434_p9), %s2091_s19, 0 }
 0x36d   : > { %1341 = sbr.rel (%p1435_p10) target bundleno = 892 (0x37c), region = 140  ;;  %s2189_s12 = smov (!%p1435_p10), %s2085_s15 }
 0x36e   : > { %s2190_s17 = smov (!%p1435_p10), %s2044_s28  ;;  %s2100_s20 = smov (!%p1435_p10), 0  }
 0x36f   : > { %s2102_s21 = smov (!%p1435_p10), 0  }
 0x372 LB: >> { %v1219_v61 = vld [vmem:[%s1811_s17] sm:$0xff]  ;;  %v1221_v62 = vld [vmem:[%s1811_s17 + $0x8] sm:$0xff]  ;;  %v1223_v63 = vld [vmem:[%s1811_s17 + $0x10] sm:$0xff]  ;;  %s1251_s22 = sadd.s32 1, %s1815_s20  ;;  %s1213_s21 = sadd.s32 1, %s1819_s21   ;;  %s1819_s21 = sphi %s2102_s21, %s1213_s21   ;;  %s1815_s20 = sphi %s2100_s20, %s2191_s20   ;;  %s1811_s17 = sphi %s2190_s17, %s1256_s17   ;;  %s1807_s12 = sphi %s2189_s12, %s1257_s12  }
 0x373   : >> { %1220 = vst [vmem:[%s1807_s12] sm:$0xff] %v1219_v61  ;;  %1222 = vst [vmem:[%s1807_s12 + $0x8] sm:$0xff] %v1221_v62  ;;  %v1225_v0 = vld [vmem:[%s1811_s17 + $0x18] sm:$0xff]  ;;  %v1227_v1 = vld [vmem:[%s1811_s17 + $0x20] sm:$0xff]  ;;  %p1252_p11 = scmp.ge.s32.totalorder %s1251_s22, %s2091_s19  ;;  %p1212_p12 = scmp.ge.s32.totalorder %s1213_s21, %s2091_s19 }
 0x374   : >> { %1224 = vst [vmem:[%s1807_s12 + $0x10] sm:$0xff] %v1223_v63  ;;  %v1229_v2 = vld [vmem:[%s1811_s17 + $0x28] sm:$0xff]  ;;  %1226 = vst [vmem:[%s1807_s12 + $0x18] sm:$0xff] %v1225_v0  ;;  %v1231_v3 = vld [vmem:[%s1811_s17 + $0x30] sm:$0xff] }
 0x375   : >> { %1228 = vst [vmem:[%s1807_s12 + $0x20] sm:$0xff] %v1227_v1  ;;  %1230 = vst [vmem:[%s1807_s12 + $0x28] sm:$0xff] %v1229_v2  ;;  %v1233_v4 = vld [vmem:[%s1811_s17 + $0x38] sm:$0xff]  ;;  %v1235_v5 = vld [vmem:[%s1811_s17 + $0x40] sm:$0xff]  ;;  %s2198_s22 = smov (%p1252_p11, %s1251_s22), 0 }
 0x376   : >> { %1232 = vst [vmem:[%s1807_s12 + $0x30] sm:$0xff] %v1231_v3  ;;  %1234 = vst [vmem:[%s1807_s12 + $0x38] sm:$0xff] %v1233_v4  ;;  %v1237_v6 = vld [vmem:[%s1811_s17 + $0x48] sm:$0xff]  ;;  %v1239_v7 = vld [vmem:[%s1811_s17 + $0x50] sm:$0xff]  ;;  %s1436_s23 = sshll.u32 %s2198_s22, 7  ;;  %s2191_s20 = smov %s2198_s22 }
 0x377   : >> { %1236 = vst [vmem:[%s1807_s12 + $0x40] sm:$0xff] %v1235_v5  ;;  %v1241_v8 = vld [vmem:[%s1811_s17 + $0x58] sm:$0xff]  ;;  %1238 = vst [vmem:[%s1807_s12 + $0x48] sm:$0xff] %v1237_v6  ;;  %v1243_v9 = vld [vmem:[%s1811_s17 + $0x60] sm:$0xff]  ;;  %1215 = sbr.rel (!%p1212_p12) target bundleno = 882 (0x372), region = 146 }
 0x378   : >> { %1240 = vst [vmem:[%s1807_s12 + $0x50] sm:$0xff] %v1239_v7  ;;  %1242 = vst [vmem:[%s1807_s12 + $0x58] sm:$0xff] %v1241_v8  ;;  %v1245_v10 = vld [vmem:[%s1811_s17 + $0x68] sm:$0xff]  ;;  %v1247_v11 = vld [vmem:[%s1811_s17 + $0x70] sm:$0xff] }
 0x379   : >> { %1244 = vst [vmem:[%s1807_s12 + $0x60] sm:$0xff] %v1243_v9  ;;  %1246 = vst [vmem:[%s1807_s12 + $0x68] sm:$0xff] %v1245_v10  ;;  %v1249_v12 = vld [vmem:[%s1811_s17 + $0x78] sm:$0xff]  ;;  %s1256_s17 = scalar_lea.vmem %s2044_s28, %s1436_s23 [#allocation2]  }
 0x37a   : >> { %1248 = vst [vmem:[%s1807_s12 + $0x70] sm:$0xff] %v1247_v11  ;;  %1250 = vst [vmem:[%s1807_s12 + $0x78] sm:$0xff] %v1249_v12  ;;  %s1257_s12 = scalar_lea.vmem %s2085_s15, %s1436_s23  }
 0x37c PF: > { %s2160_s24 = sand.u32 15, %s2196_s30   ;;  %s1447_s25 = sshll.u32 %s2091_s19, 7 }
 0x37d   : > { %s1262_s26 = scalar_lea.vmem %s2044_s28, %s1447_s25 [#allocation2]   ;;  %s1264_s27 = scalar_lea.vmem %s2085_s15, %s1447_s25  }
 0x37e   : > { %p1441_p13 = scmp.le.s32.totalorder %s2160_s24, 0 }
 0x37f   : > { %s1821_s29 = smov (!%p1441_p13), %s1264_s27   ;;  %s1825_s11 = smov (!%p1441_p13), %s1262_s26  }
 0x380   : > { %1355 = sbr.rel (%p1441_p13) target bundleno = 909 (0x38d), region = 151  ;;  %s1829_s14 = smov (!%p1441_p13), 0  }
 0x381   : > { %s1833_s18 = smov (!%p1441_p13), 0  }
 0x385 LB: >> { %v1274_v13 = vld [vmem:[%s1827_s11] sm:$0xff]  ;;  %s1276_s30 = sadd.s32 1, %s1831_s14  ;;  %s1268_s18 = sadd.s32 1, %s1835_s18   ;;  %s1835_s18 = sphi %s1833_s18, %s1268_s18   ;;  %s1831_s14 = sphi %s1829_s14, %s1830_s14   ;;  %s1827_s11 = sphi %s1825_s11, %s1281_s11   ;;  %s1823_s29 = sphi %s1821_s29, %s1282_s29  }
 0x386   : >> { %1275 = vst [vmem:[%s1823_s29] sm:$0xff] %v1274_v13  ;;  %p1277_p0 = scmp.ge.s32.totalorder %s1276_s30, %s2160_s24  ;;  %p1267_p1 = scmp.ge.s32.totalorder %s1268_s18, %s2160_s24 }
 0x388   : >> { %s2200_s30 = smov (%p1277_p0, %s1276_s30), 0  ;;  %1270 = sbr.rel (!%p1267_p1) target bundleno = 901 (0x385), region = 157 }
 0x389   : >> { %s1442_s28 = sshll.u32 %s2200_s30, 3  ;;  %s1830_s14 = smov %s2200_s30  }
 0x38a   : >> { %s1281_s11 = scalar_lea.vmem %s1262_s26, %s1442_s28 [#allocation2]   ;;  %s1282_s29 = scalar_lea.vmem %s1264_s27, %s1442_s28  }
 0x38d PF: > { %p16_p2 = scmp.ge.s32.totalorder %s1902_s13, 4   ;;  %s2192_s30 = smov %s1799_s10 }
 0x38e   : > { %s2193_s10 = smov %s1910_s16  ;;  %s2194_s11 = smov %s1902_s13 }
 0x38f   :  { %18 = sbr.rel (!%p16_p2) target bundleno = 2 (0x2), region = 168 }

</bundles_post_ra>
